<compile_context>
chip_gen: v7x
topology: tpu7x:2x2x1
jax: 0.10.0
libtpu: 0.0.40
codegen_flags: <defaults>
</compile_context>

<pallas_src>
import functools

import jax
import jax.numpy as jnp
from jax.experimental import pallas as pl
from jax.experimental.pallas import tpu as pltpu

Z_DIM = 32
X_DIM = 121
H1, H2, H3, H4 = 256, 128, 128, 1


def _round_up(n, m):
    return ((n + m - 1) // m) * m


def _pick_row_tile(batch):
    """Batch rows per grid step (static)."""
    if batch >= 4096:
        return 1024       # big tiles; grid still >= 2 for v7x megacore
    if batch >= 256:
        return 256        # matches v6e/v7x MXU width, grid >= 1
    return _round_up(batch, 16)   # small batches: one step, 16-row aligned


def _leaky_relu(x, negative_slope=0.2):
    return jnp.where(x > 0, x, negative_slope * x)


def _mlp_kernel(x_ref, z_ref, w1x_ref, w1z_ref, b1_ref, w2_ref, b2_ref,
                w3_ref, b3_ref, w4t_ref, b4_ref, o_ref):
    bf16 = jnp.bfloat16
    # ---- Layer 1 (concat fused): x @ W1[:121] + z @ W1[121:] ----------------
    h = jnp.dot(x_ref[...].astype(bf16), w1x_ref[...],
                preferred_element_type=jnp.float32)
    h = h + jnp.dot(z_ref[...].astype(bf16), w1z_ref[...],
                    preferred_element_type=jnp.float32)
    h = _leaky_relu(h + b1_ref[...])
    # ---- Layer 2: (TB, 256) @ (256, 128) ------------------------------------
    h = jnp.dot(h.astype(bf16), w2_ref[...], preferred_element_type=jnp.float32)
    h = _leaky_relu(h + b2_ref[...])
    # ---- Layer 3: (TB, 128) @ (128, 128) ------------------------------------
    h = jnp.dot(h.astype(bf16), w3_ref[...], preferred_element_type=jnp.float32)
    h = _leaky_relu(h + b3_ref[...])
    # ---- Layer 4, lane-dense: (1,128) . (TB,128) over features -> (1, TB) ---
    out = jax.lax.dot_general(
        w4t_ref[...], h.astype(bf16),
        dimension_numbers=(((1,), (1,)), ((), ())),
        preferred_element_type=jnp.float32)
    o_ref[...] = out + b4_ref[...]


@jax.jit
def statistics_network_forward(x, z, params):
    """x: (B, 121), z: (B, z_dim) -> (B,) float32."""
    w1, b1, w2, b2, w3, b3, w4, b4 = params
    B = x.shape[0]
    z_dim = z.shape[1]

    row_tile = _pick_row_tile(B)
    b_pad = _round_up(B, row_tile)

    xp = x.astype(jnp.float32)
    zp = z.astype(jnp.float32)
    if b_pad != B:  # pad the batch (rows are independent; padded rows discarded)
        xp = jnp.pad(xp, ((0, b_pad - B), (0, 0)))
        zp = jnp.pad(zp, ((0, b_pad - B), (0, 0)))

    # Weights: split W1 for the fused concat, pre-cast to bf16 (tiny, resident).
    w1x = w1[:X_DIM].astype(jnp.bfloat16)          # (121, 256)
    w1z = w1[X_DIM:].astype(jnp.bfloat16)          # (z_dim, 256)
    w2b = w2.astype(jnp.bfloat16)                  # (256, 128)
    w3b = w3.astype(jnp.bfloat16)                  # (128, 128)
    w4t = w4.T.astype(jnp.bfloat16)                # (1, 128)

    # Biases as 2-D f32 tiles for clean broadcasting.
    b1_2d = b1.reshape(1, H1).astype(jnp.float32)
    b2_2d = b2.reshape(1, H2).astype(jnp.float32)
    b3_2d = b3.reshape(1, H3).astype(jnp.float32)
    b4_2d = b4.reshape(1, H4).astype(jnp.float32)  # (1, 1)

    grid = (b_pad // row_tile,)
    rep = lambda i: (0, 0)  # weights/biases: same (resident) block every step

    out = pl.pallas_call(
        _mlp_kernel,
        out_shape=jax.ShapeDtypeStruct((1, b_pad), jnp.float32),
        grid_spec=pltpu.PrefetchScalarGridSpec(
            num_scalar_prefetch=0,
            grid=grid,
            in_specs=[
                pl.BlockSpec((row_tile, X_DIM), lambda i: (i, 0)),   # x
                pl.BlockSpec((row_tile, z_dim), lambda i: (i, 0)),   # z
                pl.BlockSpec((X_DIM, H1), rep),                      # W1[:121]
                pl.BlockSpec((z_dim, H1), rep),                      # W1[121:]
                pl.BlockSpec((1, H1), rep),                          # b1
                pl.BlockSpec((H1, H2), rep),                         # W2
                pl.BlockSpec((1, H2), rep),                          # b2
                pl.BlockSpec((H2, H3), rep),                         # W3
                pl.BlockSpec((1, H3), rep),                          # b3
                pl.BlockSpec((1, H3), rep),                          # W4^T
                pl.BlockSpec((1, H4), rep),                          # b4
            ],
            out_specs=pl.BlockSpec((1, row_tile), lambda i: (0, i)),  # lane-dense
        ),
        compiler_params=pltpu.CompilerParams(
            dimension_semantics=("parallel",)),
    )(xp, zp, w1x, w1z, b1_2d, w2b, b2_2d, w3b, b3_2d, w4t, b4_2d)

    return out[0, :B]  # squeeze(-1)


def init_params(key, z_dim=Z_DIM):
    """Deterministic init matching PyTorch nn.Linear default U(-1/sqrt(fan_in), +)."""
    dims = [(X_DIM + z_dim, H1), (H1, H2), (H2, H3), (H3, H4)]
    params = []
    for (fan_in, fan_out) in dims:
        key, kw, kb = jax.random.split(key, 3)
        bound = 1.0 / jnp.sqrt(fan_in)
        w = jax.random.uniform(kw, (fan_in, fan_out), jnp.float32, -bound, bound)
        b = jax.random.uniform(kb, (fan_out,), jnp.float32, -bound, bound)
        params.extend([w, b])
    return tuple(params)


def _reference_forward(x, z, params):
    """Pure-JAX f32 reference (exact PyTorch semantics)."""
    w1, b1, w2, b2, w3, b3, w4, b4 = params
    h = jnp.concatenate([x, z], axis=-1)
    h = _leaky_relu(h @ w1 + b1)
    h = _leaky_relu(h @ w2 + b2)
    h = _leaky_relu(h @ w3 + b3)
    return (h @ w4 + b4)[..., 0]


if __name__ == "__main__":
    key = jax.random.PRNGKey(0)
    kp, kx, kz = jax.random.split(key, 3)

    params = init_params(kp, Z_DIM)
    B = 37  # small, non-multiple of the tile -> exercises padding path
    x = jax.random.normal(kx, (B, X_DIM), jnp.float32)
    z = jax.random.normal(kz, (B, Z_DIM), jnp.float32)

    out = statistics_network_forward(x, z, params)
    out = jax.block_until_ready(out)

    ref = _reference_forward(x, z, params)
    assert out.shape == (B,), out.shape
    # bf16 MXU operands vs. f32 reference -> loose tolerance (f32 accumulation).
    assert jnp.allclose(out, ref, atol=5e-2, rtol=5e-2), (
        float(jnp.max(jnp.abs(out - ref))), out, ref)
    print("KERNEL_OK")
</pallas_src>

<mosaic_0001>
module attributes {stable_mosaic.version = 11 : i64} {
  func.func @_mlp_kernel(%arg0: i32, %arg1: memref<48x121xf32, #tpu.memory_space<vmem>>, %arg2: memref<48x32xf32, #tpu.memory_space<vmem>>, %arg3: memref<121x256xbf16, #tpu.memory_space<vmem>>, %arg4: memref<32x256xbf16, #tpu.memory_space<vmem>>, %arg5: memref<1x256xf32, #tpu.memory_space<vmem>>, %arg6: memref<256x128xbf16, #tpu.memory_space<vmem>>, %arg7: memref<1x128xf32, #tpu.memory_space<vmem>>, %arg8: memref<128x128xbf16, #tpu.memory_space<vmem>>, %arg9: memref<1x128xf32, #tpu.memory_space<vmem>>, %arg10: memref<1x128xbf16, #tpu.memory_space<vmem>>, %arg11: memref<1x1xf32, #tpu.memory_space<vmem>>, %arg12: memref<1x48xf32, #tpu.memory_space<vmem>>) attributes {dimension_semantics = [#tpu.dimension_semantics<parallel>], iteration_bounds = array<i64: 1>, scalar_prefetch = 0 : i64, scratch_operands = 0 : i64, tpu.core_type = #tpu.core_type<tc>, window_params = [{transform_indices = @transform_0, window_bounds = array<i64: 48, 121>}, {transform_indices = @transform_1, window_bounds = array<i64: 48, 32>}, {pipeline_mode = #tpu.pipeline_mode<synchronous>, transform_indices = @transform_2, window_bounds = array<i64: 121, 256>}, {pipeline_mode = #tpu.pipeline_mode<synchronous>, transform_indices = @transform_3, window_bounds = array<i64: 32, 256>}, {pipeline_mode = #tpu.pipeline_mode<synchronous>, transform_indices = @transform_4, window_bounds = array<i64: 1, 256>}, {pipeline_mode = #tpu.pipeline_mode<synchronous>, transform_indices = @transform_5, window_bounds = array<i64: 256, 128>}, {pipeline_mode = #tpu.pipeline_mode<synchronous>, transform_indices = @transform_6, window_bounds = array<i64: 1, 128>}, {pipeline_mode = #tpu.pipeline_mode<synchronous>, transform_indices = @transform_7, window_bounds = array<i64: 128, 128>}, {pipeline_mode = #tpu.pipeline_mode<synchronous>, transform_indices = @transform_8, window_bounds = array<i64: 1, 128>}, {pipeline_mode = #tpu.pipeline_mode<synchronous>, transform_indices = @transform_9, window_bounds = array<i64: 1, 128>}, {pipeline_mode = #tpu.pipeline_mode<synchronous>, transform_indices = @transform_10, window_bounds = array<i64: 1, 1>}, {transform_indices = @transform_11, window_bounds = array<i64: 1, 48>}]} {
    %c0 = arith.constant 0 : index
    %c0_0 = arith.constant 0 : index
    %0 = vector.load %arg1[%c0, %c0_0] : memref<48x121xf32, #tpu.memory_space<vmem>>, vector<48x121xf32>
    %1 = arith.truncf %0 : vector<48x121xf32> to vector<48x121xbf16>
    %c0_1 = arith.constant 0 : index
    %c0_2 = arith.constant 0 : index
    %2 = vector.load %arg3[%c0_1, %c0_2] : memref<121x256xbf16, #tpu.memory_space<vmem>>, vector<121x256xbf16>
    %cst = arith.constant dense<0.000000e+00> : vector<48x256xf32>
    %3 = tpu.matmul %1, %2, %cst {dimension_numbers = #tpu.dot_dimension_numbers<[1], [0], [0], [1], [0, 0, 1, 1], [], []>} : vector<48x121xbf16>, vector<121x256xbf16>, vector<48x256xf32> -> vector<48x256xf32>
    %c0_3 = arith.constant 0 : index
    %c0_4 = arith.constant 0 : index
    %4 = vector.load %arg2[%c0_3, %c0_4] : memref<48x32xf32, #tpu.memory_space<vmem>>, vector<48x32xf32>
    %5 = arith.truncf %4 : vector<48x32xf32> to vector<48x32xbf16>
    %c0_5 = arith.constant 0 : index
    %c0_6 = arith.constant 0 : index
    %6 = vector.load %arg4[%c0_5, %c0_6] : memref<32x256xbf16, #tpu.memory_space<vmem>>, vector<32x256xbf16>
    %cst_7 = arith.constant dense<0.000000e+00> : vector<48x256xf32>
    %7 = tpu.matmul %5, %6, %cst_7 {dimension_numbers = #tpu.dot_dimension_numbers<[1], [0], [0], [1], [0, 0, 1, 1], [], []>} : vector<48x32xbf16>, vector<32x256xbf16>, vector<48x256xf32> -> vector<48x256xf32>
    %8 = arith.addf %3, %7 : vector<48x256xf32>
    %c0_8 = arith.constant 0 : index
    %c0_9 = arith.constant 0 : index
    %9 = vector.load %arg5[%c0_8, %c0_9] : memref<1x256xf32, #tpu.memory_space<vmem>>, vector<1x256xf32>
    %10 = vector.broadcast %9 : vector<1x256xf32> to vector<48x256xf32>
    %11 = arith.addf %8, %10 : vector<48x256xf32>
    %cst_10 = arith.constant 0.000000e+00 : f32
    %12 = vector.broadcast %cst_10 : f32 to vector<48x256xf32>
    %13 = arith.cmpf ogt, %11, %12 : vector<48x256xf32>
    %cst_11 = arith.constant 2.000000e-01 : f32
    %14 = vector.broadcast %cst_11 : f32 to vector<48x256xf32>
    %15 = arith.mulf %14, %11 : vector<48x256xf32>
    %16 = arith.select %13, %11, %15 : vector<48x256xi1>, vector<48x256xf32>
    %17 = arith.truncf %16 : vector<48x256xf32> to vector<48x256xbf16>
    %c0_12 = arith.constant 0 : index
    %c0_13 = arith.constant 0 : index
    %18 = vector.load %arg6[%c0_12, %c0_13] : memref<256x128xbf16, #tpu.memory_space<vmem>>, vector<256x128xbf16>
    %cst_14 = arith.constant dense<0.000000e+00> : vector<48x128xf32>
    %19 = tpu.matmul %17, %18, %cst_14 {dimension_numbers = #tpu.dot_dimension_numbers<[1], [0], [0], [1], [0, 0, 1, 1], [], []>} : vector<48x256xbf16>, vector<256x128xbf16>, vector<48x128xf32> -> vector<48x128xf32>
    %c0_15 = arith.constant 0 : index
    %c0_16 = arith.constant 0 : index
    %20 = vector.load %arg7[%c0_15, %c0_16] : memref<1x128xf32, #tpu.memory_space<vmem>>, vector<1x128xf32>
    %21 = vector.broadcast %20 : vector<1x128xf32> to vector<48x128xf32>
    %22 = arith.addf %19, %21 : vector<48x128xf32>
    %cst_17 = arith.constant 0.000000e+00 : f32
    %23 = vector.broadcast %cst_17 : f32 to vector<48x128xf32>
    %24 = arith.cmpf ogt, %22, %23 : vector<48x128xf32>
    %cst_18 = arith.constant 2.000000e-01 : f32
    %25 = vector.broadcast %cst_18 : f32 to vector<48x128xf32>
    %26 = arith.mulf %25, %22 : vector<48x128xf32>
    %27 = arith.select %24, %22, %26 : vector<48x128xi1>, vector<48x128xf32>
    %28 = arith.truncf %27 : vector<48x128xf32> to vector<48x128xbf16>
    %c0_19 = arith.constant 0 : index
    %c0_20 = arith.constant 0 : index
    %29 = vector.load %arg8[%c0_19, %c0_20] : memref<128x128xbf16, #tpu.memory_space<vmem>>, vector<128x128xbf16>
    %cst_21 = arith.constant dense<0.000000e+00> : vector<48x128xf32>
    %30 = tpu.matmul %28, %29, %cst_21 {dimension_numbers = #tpu.dot_dimension_numbers<[1], [0], [0], [1], [0, 0, 1, 1], [], []>} : vector<48x128xbf16>, vector<128x128xbf16>, vector<48x128xf32> -> vector<48x128xf32>
    %c0_22 = arith.constant 0 : index
    %c0_23 = arith.constant 0 : index
    %31 = vector.load %arg9[%c0_22, %c0_23] : memref<1x128xf32, #tpu.memory_space<vmem>>, vector<1x128xf32>
    %32 = vector.broadcast %31 : vector<1x128xf32> to vector<48x128xf32>
    %33 = arith.addf %30, %32 : vector<48x128xf32>
    %cst_24 = arith.constant 0.000000e+00 : f32
    %34 = vector.broadcast %cst_24 : f32 to vector<48x128xf32>
    %35 = arith.cmpf ogt, %33, %34 : vector<48x128xf32>
    %cst_25 = arith.constant 2.000000e-01 : f32
    %36 = vector.broadcast %cst_25 : f32 to vector<48x128xf32>
    %37 = arith.mulf %36, %33 : vector<48x128xf32>
    %38 = arith.select %35, %33, %37 : vector<48x128xi1>, vector<48x128xf32>
    %c0_26 = arith.constant 0 : index
    %c0_27 = arith.constant 0 : index
    %39 = vector.load %arg10[%c0_26, %c0_27] : memref<1x128xbf16, #tpu.memory_space<vmem>>, vector<1x128xbf16>
    %40 = arith.truncf %38 : vector<48x128xf32> to vector<48x128xbf16>
    %cst_28 = arith.constant dense<0.000000e+00> : vector<1x48xf32>
    %41 = tpu.matmul %39, %40, %cst_28 {dimension_numbers = #tpu.dot_dimension_numbers<[1], [1], [0], [0], [0, 0, 1, 0], [], []>} : vector<1x128xbf16>, vector<48x128xbf16>, vector<1x48xf32> -> vector<1x48xf32>
    %c0_29 = arith.constant 0 : index
    %c0_30 = arith.constant 0 : index
    %42 = vector.load %arg11[%c0_29, %c0_30] : memref<1x1xf32, #tpu.memory_space<vmem>>, vector<1x1xf32>
    %43 = vector.broadcast %42 : vector<1x1xf32> to vector<1x48xf32>
    %44 = arith.addf %41, %43 : vector<1x48xf32>
    %c0_31 = arith.constant 0 : index
    %c0_32 = arith.constant 0 : index
    %45 = vector.load %arg12[%c0_31, %c0_32] : memref<1x48xf32, #tpu.memory_space<vmem>>, vector<1x48xf32>
    tpu.vector_store %arg12[%c0_31, %c0_32], %44 {strides = array<i32>} : memref<1x48xf32, #tpu.memory_space<vmem>>, vector<1x48xf32>,
    return
  }
  func.func @transform_0(%arg0: i32) -> (i32, i32) {
    %c0_i32 = arith.constant 0 : i32
    %c0_i32_0 = arith.constant 0 : i32
    return %arg0, %c0_i32 : i32, i32
  }
  func.func @transform_1(%arg0: i32) -> (i32, i32) {
    %c0_i32 = arith.constant 0 : i32
    %c0_i32_0 = arith.constant 0 : i32
    return %arg0, %c0_i32 : i32, i32
  }
  func.func @transform_2(%arg0: i32) -> (i32, i32) {
    %c0_i32 = arith.constant 0 : i32
    %c0_i32_0 = arith.constant 0 : i32
    %c0_i32_1 = arith.constant 0 : i32
    return %c0_i32, %c0_i32_0 : i32, i32
  }
  func.func @transform_3(%arg0: i32) -> (i32, i32) {
    %c0_i32 = arith.constant 0 : i32
    %c0_i32_0 = arith.constant 0 : i32
    %c0_i32_1 = arith.constant 0 : i32
    return %c0_i32, %c0_i32_0 : i32, i32
  }
  func.func @transform_4(%arg0: i32) -> (i32, i32) {
    %c0_i32 = arith.constant 0 : i32
    %c0_i32_0 = arith.constant 0 : i32
    %c0_i32_1 = arith.constant 0 : i32
    return %c0_i32, %c0_i32_0 : i32, i32
  }
  func.func @transform_5(%arg0: i32) -> (i32, i32) {
    %c0_i32 = arith.constant 0 : i32
    %c0_i32_0 = arith.constant 0 : i32
    %c0_i32_1 = arith.constant 0 : i32
    return %c0_i32, %c0_i32_0 : i32, i32
  }
  func.func @transform_6(%arg0: i32) -> (i32, i32) {
    %c0_i32 = arith.constant 0 : i32
    %c0_i32_0 = arith.constant 0 : i32
    %c0_i32_1 = arith.constant 0 : i32
    return %c0_i32, %c0_i32_0 : i32, i32
  }
  func.func @transform_7(%arg0: i32) -> (i32, i32) {
    %c0_i32 = arith.constant 0 : i32
    %c0_i32_0 = arith.constant 0 : i32
    %c0_i32_1 = arith.constant 0 : i32
    return %c0_i32, %c0_i32_0 : i32, i32
  }
  func.func @transform_8(%arg0: i32) -> (i32, i32) {
    %c0_i32 = arith.constant 0 : i32
    %c0_i32_0 = arith.constant 0 : i32
    %c0_i32_1 = arith.constant 0 : i32
    return %c0_i32, %c0_i32_0 : i32, i32
  }
  func.func @transform_9(%arg0: i32) -> (i32, i32) {
    %c0_i32 = arith.constant 0 : i32
    %c0_i32_0 = arith.constant 0 : i32
    %c0_i32_1 = arith.constant 0 : i32
    return %c0_i32, %c0_i32_0 : i32, i32
  }
  func.func @transform_10(%arg0: i32) -> (i32, i32) {
    %c0_i32 = arith.constant 0 : i32
    %c0_i32_0 = arith.constant 0 : i32
    %c0_i32_1 = arith.constant 0 : i32
    return %c0_i32, %c0_i32_0 : i32, i32
  }
  func.func @transform_11(%arg0: i32) -> (i32, i32) {
    %c0_i32 = arith.constant 0 : i32
    %c0_i32_0 = arith.constant 0 : i32
    return %c0_i32, %arg0 : i32, i32
  }
}

</mosaic_0001>

<bundles_post_ra>
// kernel: statistics_network_forward.1
= control target key start
LH: loop header
LB: loop body
LE: loop exit
PB: predicated region body
PF: predicated region fallthrough
CT: control target
= control target key end

     0   :  { %v1028_v1 = vmov 0   ;;  %vm99_vm0 = vcmask 261120   ;;  %vm260_vm1 = vcmask 1043456   ;;  %vm261_vm2 = vcmask 1044480   ;;  %s1324_s3 = inlined_call_operand.vmem [shape: bf16[32,256], index: 3, kind: input, shape index: {}]   ;;  %s1325_s2 = inlined_call_operand.vmem [shape: bf16[121,256], index: 2, kind: input, shape index: {}]   ;;  %s1326_s1 = inlined_call_operand.vmem [shape: f32[48,32], index: 1, kind: input, shape index: {}]   ;;  %s1327_s5 = inlined_call_operand.vmem [shape: bf16[256,128], index: 5, kind: input, shape index: {}]   ;;  %s1328_s0 = inlined_call_operand.vmem [shape: f32[48,121], index: 0, kind: input, shape index: {}]   ;;  %s1329_s7 = inlined_call_operand.vmem [shape: bf16[128,128], index: 7, kind: input, shape index: {}]   ;;  %s1330_s4 = inlined_call_operand.vmem [shape: f32[1,256], index: 4, kind: input, shape index: {}]   ;;  %s1331_s6 = inlined_call_operand.vmem [shape: f32[1,128], index: 6, kind: input, shape index: {}]   ;;  %s1332_s10 = inlined_call_operand.<no memory space> [shape: f32[1,1], index: 10, kind: input, shape index: {}]   ;;  %s1333_s8 = inlined_call_operand.vmem [shape: f32[1,128], index: 8, kind: input, shape index: {}]   ;;  %s1334_s9 = inlined_call_operand.vmem [shape: bf16[1,128], index: 9, kind: input, shape index: {}]   ;;  %s1335_s11 = inlined_call_operand.vmem [shape: f32[1,48], index: 11, kind: output, shape index: {}]  }
   0x1   :  { %v974_v0 = vld [vmem:[%s1324_s3 + $0x4] ss:$8 sps:$4 sm:$0xff]   ;;  %141 = vmatprep.mubr.bf16.mxu0 %v1028_v1  ;;  %973 = vset.pattern.permute.xlu0 %v1028_v1  ;;  %v976_v2 = vld [vmem:[%s1324_s3] ss:$8 sps:$4 sm:$0xff]   ;;  %v977_v3 = vld [vmem:[%s1324_s3 + $0x14] ss:$8 sps:$4 sm:$0xff]   ;;  %v335_v61 = vlaneseq }
   0x2   :  { %109 = vmatprep.subr.bf16.mxu0 %v974_v0  ;;  %v979_v4 = vld [vmem:[%s1324_s3 + $0x10] ss:$8 sps:$4 sm:$0xff]   ;;  %v982_v5 = vld [vmem:[%s1325_s2 + $0x4] ss:$8 sps:$4 sm:$0xff]   ;;  %v980_v9 = vld [vmem:[%s1325_s2] ss:$8 sps:$4 sm:$0xff]  }
   0x3   :  { %110 = vmatpush1.bf16.msra.mxu0 %v976_v2  ;;  %v66_v6 = vld [vmem:[%s1326_s1] sm:$0xff]  ;;  %v67_v7 = vld [vmem:[%s1326_s1 + $0x8] sm:$0xff]  ;;  %v985_v10 = vld [vmem:[%s1325_s2 + $0x14] ss:$8 sps:$4 sm:$0xff]   ;;  %v1029_v27 = vmov 65535   ;;  %vm250_vm3 = vcmask 990208  }
   0x4   :  { %111 = vmatprep.subr.bf16.mxu0 %v977_v3  ;;  %v72_v8 = vpack.c.bf16 %v67_v7, %v66_v6  ;;  %v983_v11 = vld [vmem:[%s1325_s2 + $0x10] ss:$8 sps:$4 sm:$0xff]   ;;  %v988_v14 = vld [vmem:[%s1325_s2 + $0x24] ss:$8 sps:$4 sm:$0xff]   ;;  %v986_v16 = vld [vmem:[%s1325_s2 + $0x20] ss:$8 sps:$4 sm:$0xff]  }
   0x5   :  { %v68_v12 = vld [vmem:[%s1326_s1 + $0x10] sm:$0xff]  ;;  %v69_v13 = vld [vmem:[%s1326_s1 + $0x18] sm:$0xff]  ;;  %v70_v19 = vld [vmem:[%s1326_s1 + $0x20] sm:$0xff]  ;;  %v262_v28 = vsel %vm260_vm1, 4294967295, %v1029_v27  ;;  %v1030_v60 = vmov 0.0   ;;  %v1249_v62 = vshrl.u32 %v335_v61, 7 }
   0x6   :  { %v73_v15 = vpack.c.bf16 %v69_v13, %v68_v12  ;;  %v991_v17 = vld [vmem:[%s1325_s2 + $0x34] ss:$8 sps:$4 sm:$0xff]   ;;  %v989_v18 = vld [vmem:[%s1325_s2 + $0x30] ss:$8 sps:$4 sm:$0xff]   ;;  %v71_v20 = vld [vmem:[%s1326_s1 + $0x28] sm:$0xff]  ;;  %v263_v37 = vsel %vm261_vm2, %v262_v28, 0 }
   0x7   :  { %112 = vmatpush1.bf16.msra.mxu0 %v979_v4  ;;  %v994_v21 = vld [vmem:[%s1325_s2 + $0x44] ss:$8 sps:$4 sm:$0xff]   ;;  %v74_v26 = vpack.c.bf16 %v71_v20, %v70_v19  ;;  %v1008_v29 = vld [vmem:[%s1327_s5 + $0x50] sm:$0xff]   ;;  %v992_v30 = vld [vmem:[%s1325_s2 + $0x40] ss:$8 sps:$4 sm:$0xff]   ;;  %v337_v63 = vsub.s32 0, %v1249_v62 }
   0x8   :  { %270 = vmatprep.subr.bf16.mxu0 %v982_v5  ;;  %v1004_v22 = vld [vmem:[%s1327_s5 + $0x40] sm:$0xff]   ;;  %v1006_v24 = vld [vmem:[%s1327_s5 + $0x48] sm:$0xff]   ;;  %v997_v31 = vld [vmem:[%s1325_s2 + $0x54] ss:$8 sps:$4 sm:$0xff]  }
   0x9   :  { %v1005_v23 = vld [vmem:[%s1327_s5] sm:$0xff]   ;;  %870 = vmatprep.subr.bf16.mxu1 %v1004_v22  ;;  %v1007_v25 = vld [vmem:[%s1327_s5 + $0x8] sm:$0xff]   ;;  %v995_v32 = vld [vmem:[%s1325_s2 + $0x50] ss:$8 sps:$4 sm:$0xff]  }
   0xa   :  { %822 = vmatmul.mubr.msk.bf16.vlgmr.msra.gmra.mrb[0].mxu0 %vm99_vm0, %v72_v8  ;;  %871 = vmatpush3.bf16.msra.mxu1 %v1005_v23  ;;  %v1009_v33 = vld [vmem:[%s1327_s5 + $0x10] sm:$0xff]   ;;  %v1000_v34 = vld [vmem:[%s1325_s2 + $0x64] ss:$8 sps:$4 sm:$0xff]   ;;  %v1010_v36 = vld [vmem:[%s1327_s5 + $0x58] sm:$0xff]  }
   0xb   :  { %271 = vmatpush1.bf16.msra.mxu0 %v980_v9  ;;  %151 = vmatprep.mubr.bf16.mxu0 %v1028_v1  ;;  %v1003_v35 = vld [vmem:[%s1325_s2 + $0x74] ss:$8 sps:$4 sm:$0x1f]   ;;  %v1012_v39 = vld [vmem:[%s1327_s5 + $0x60] sm:$0xff]   ;;  %v42_v46 = vld [vmem:[%s1328_s0 + $0x8] sm:$0xff] }
   0xc   :  { %272 = vmatprep.subr.bf16.mxu0 %v985_v10  ;;  %872 = vmatprep.subr.bf16.mxu1 %v1006_v24  ;;  %v1011_v38 = vld [vmem:[%s1327_s5 + $0x18] sm:$0xff]   ;;  %v998_v40 = vld [vmem:[%s1325_s2 + $0x60] ss:$8 sps:$4 sm:$0xff]   ;;  %v268_v42 = vand.u32 %v1003_v35, %v263_v37  ;;  %v43_v48 = vld [vmem:[%s1328_s0 + $0x10] sm:$0xff] }
   0xd   :  { %v1001_v41 = vld [vmem:[%s1325_s2 + $0x70] ss:$8 sps:$4 sm:$0x1f]   ;;  %v1013_v43 = vld [vmem:[%s1327_s5 + $0x20] sm:$0xff]   ;;  %v46_v52 = vld [vmem:[%s1328_s0 + $0x28] sm:$0xff] }
   0xe   :  { %873 = vmatpush3.bf16.msra.mxu1 %v1007_v25  ;;  %v265_v44 = vand.u32 %v1001_v41, %v263_v37  ;;  %v41_v45 = vld [vmem:[%s1328_s0] sm:$0xff]  ;;  %v44_v49 = vld [vmem:[%s1328_s0 + $0x18] sm:$0xff]  ;;  %v1014_v54 = vld [vmem:[%s1327_s5 + $0x68] sm:$0xff]  }
   0xf   :  { %273 = vmatpush1.bf16.msra.mxu0 %v983_v11  ;;  %874 = vmatprep.subr.bf16.mxu1 %v1008_v29  ;;  %v47_v47 = vpack.c.bf16 %v42_v46, %v41_v45  ;;  %v48_v50 = vpack.c.bf16 %v44_v49, %v43_v48  ;;  %v45_v51 = vld [vmem:[%s1328_s0 + $0x20] sm:$0xff]  ;;  %v1015_v55 = vld [vmem:[%s1327_s5 + $0x28] sm:$0xff]   ;;  %v1016_v56 = vld [vmem:[%s1327_s5 + $0x70] sm:$0xff]  }
  0x10   :  { %274 = vmatprep.subr.bf16.mxu0 %v988_v14  ;;  %v49_v53 = vpack.c.bf16 %v46_v52, %v45_v51  ;;  %v1017_v57 = vld [vmem:[%s1327_s5 + $0x30] sm:$0xff]   ;;  %v1018_v58 = vld [vmem:[%s1327_s5 + $0x78] sm:$0xff]   ;;  %v333_v0 = vld [vmem:[%s1330_s4] sm:$0x3] }
  0x11   :  { %v1019_v59 = vld [vmem:[%s1327_s5 + $0x38] sm:$0xff]   ;;  %v338_v2 = vrot.slane %v333_v0, %v337_v63  ;;  %v1020_v25 = vld [vmem:[%s1329_s7] sm:$0xff]   ;;  %v1022_v45 = vld [vmem:[%s1329_s7 + $0x10] sm:$0xff]  }
  0x12   :  { %823 = vmatmul.mubr.msk.bf16.gmra.mrb[4].mxu0 %vm99_vm0, %v73_v15  ;;  %875 = vmatpush3.bf16.msra.mxu1 %v1009_v33 }
  0x13   :  { %275 = vmatpush1.bf16.msra.mxu0 %v986_v16  ;;  %161 = vmatprep.mubr.bf16.mxu0 %v1028_v1 }
  0x14   :  { %276 = vmatprep.subr.bf16.mxu0 %v991_v17  ;;  %876 = vmatprep.subr.bf16.mxu1 %v1010_v36 }
  0x16   :  { %877 = vmatpush3.bf16.msra.mxu1 %v1011_v38 }
  0x17   :  { %277 = vmatpush1.bf16.msra.mxu0 %v989_v18  ;;  %878 = vmatprep.subr.bf16.mxu1 %v1012_v39 }
  0x18   :  { %278 = vmatprep.subr.bf16.mxu0 %v994_v21 }
  0x1a   :  { %824 = vmatmul.mubr.msk.bf16.gmra.mrb[8].mxu0 %vm99_vm0, %v74_v26  ;;  %879 = vmatpush3.bf16.msra.mxu1 %v1013_v43  ;;  %vm1031_vm0 = vmmov 0  }
  0x1b   :  { %279 = vmatpush1.bf16.msra.mxu0 %v992_v30  ;;  %302 = vmatprep.mubr.bf16.mxu0 %v1028_v1 }
  0x1c   :  { %280 = vmatprep.subr.bf16.mxu0 %v997_v31  ;;  %880 = vmatprep.subr.bf16.mxu1 %v1014_v54  ;;  %v1023_v54 = vld [vmem:[%s1329_s7 + $0x18] sm:$0xff]  }
  0x1e   :  { %881 = vmatpush3.bf16.msra.mxu1 %v1015_v55 }
  0x1f   :  { %281 = vmatpush1.bf16.msra.mxu0 %v995_v32  ;;  %882 = vmatprep.subr.bf16.mxu1 %v1016_v56 }
  0x20   :  { %282 = vmatprep.subr.bf16.mxu0 %v1000_v34  ;;  %v1021_v34 = vld [vmem:[%s1329_s7 + $0x8] sm:$0xff]  }
  0x22   :  { %883 = vmatpush3.bf16.msra.mxu1 %v1017_v57 }
  0x23   :  { %283 = vmatpush1.bf16.msra.mxu0 %v998_v40  ;;  %884 = vmatprep.subr.bf16.mxu1 %v1018_v58 }
  0x24   :  { %284 = vmatprep.subr.bf16.mxu0 %v268_v42 }
  0x26   :  { %885 = vmatpush3.bf16.msra.mxu1 %v1019_v59 }
  0x27   :  { %285 = vmatpush1.bf16.msra.mxu0 %v265_v44  ;;  %919 = vmatprep.subr.bf16.mxu1 %v1030_v60 }
  0x28   :  { %947 = vmatprep.subr.bf16.mxu0 %v1030_v60 }
  0x2a   :  { %841 = vmatmul.mubr.msk.bf16.vlgmr.msra.gmra.mrb[0].mxu0 %vm250_vm3, %v47_v47 }
  0x2b   :  { %312 = vmatprep.mubr.bf16.mxu0 %v1028_v1 }
  0x32   :  { %842 = vmatmul.mubr.msk.bf16.gmra.mrb[4].mxu0 %vm250_vm3, %v48_v50 }
  0x33   :  { %322 = vmatprep.mubr.bf16.mxu0 %v1028_v1  ;;  %v341_v1 = vsub.s32 1, %v1249_v62 }
  0x35   :  { %v1258_v3 = vrot.slane %v333_v0, %v341_v1  ;;  %v1024_v1 = vld [vmem:[%s1329_s7 + $0x20] sm:$0xff]  }
  0x3a   :  { %843 = vmatmul.mubr.msk.bf16.gmra.mrb[8].mxu0 %vm250_vm3, %v49_v53 }
  0x3b   :  { %953 = vmatprep.mubr.msk.bf16.mxu0 %vm1031_vm0, %v1030_v60 }
  0xfd   :  { %v304_v4 = vpop.f32.mrb[0].mxu0 }
  0xfe   :  { %v345_v5 = vadd.f32 %v338_v2, %v304_v4  ;;  %v306_v6 = vpop.f32.mrb[1].mxu0  ;;  %v1027_v4 = vld [vmem:[%s1329_s7 + $0x38] sm:$0xff]  }
  0xff   :  { %v346_v7 = vadd.f32 %v1258_v3, %v306_v6  ;;  %v308_v8 = vpop.f32.mrb[2].mxu0  ;;  %v844_v6 = vld [vmem:[%s1331_s6] ss:$0 sm:$0xff] }
 0x100   :  { %v369_v9 = vmul.f32 0.2, %v345_v5  ;;  %v347_v10 = vadd.f32 %v338_v2, %v308_v8  ;;  %v310_v11 = vpop.f32.mrb[3].mxu0  ;;  %vm357_vm4 = vcmp.gt.f32.partialorder %v345_v5, 0.0 }
 0x101   :  { %v370_v12 = vmul.f32 0.2, %v346_v7  ;;  %v348_v13 = vadd.f32 %v1258_v3, %v310_v11  ;;  %vm358_vm6 = vcmp.gt.f32.partialorder %v346_v7, 0.0 }
 0x102   :  { %vm359_vm5 = vcmp.gt.f32.partialorder %v347_v10, 0.0  ;;  %v371_v14 = vmul.f32 0.2, %v347_v10  ;;  %v381_v16 = vsel %vm357_vm4, %v345_v5, %v369_v9 }
 0x103   :  { %v372_v15 = vmul.f32 0.2, %v348_v13  ;;  %vm360_vm7 = vcmp.gt.f32.partialorder %v348_v13, 0.0  ;;  %v382_v19 = vsel %vm358_vm6, %v346_v7, %v370_v12 }
 0x104   :  { %v383_v17 = vsel %vm359_vm5, %v347_v10, %v371_v14 }
 0x105   :  { %v314_v18 = vpop.f32.mrb[4].mxu0  ;;  %v384_v20 = vsel %vm360_vm7, %v348_v13, %v372_v15  ;;  %v393_v21 = vpack.c.bf16 %v383_v17, %v381_v16 }
 0x106   :  { %v349_v22 = vadd.f32 %v338_v2, %v314_v18  ;;  %v316_v23 = vpop.f32.mrb[5].mxu0  ;;  %v394_v24 = vpack.c.bf16 %v384_v20, %v382_v19 }
 0x107   :  { %v350_v26 = vadd.f32 %v1258_v3, %v316_v23  ;;  %v318_v27 = vpop.f32.mrb[6].mxu0 }
 0x108   :  { %v373_v28 = vmul.f32 0.2, %v349_v22  ;;  %v351_v29 = vadd.f32 %v338_v2, %v318_v27  ;;  %v320_v30 = vpop.f32.mrb[7].mxu0  ;;  %566 = vmatprep.mubr.bf16.mxu1 %v394_v24  ;;  %vm361_vm8 = vcmp.gt.f32.partialorder %v349_v22, 0.0 }
 0x109   :  { %v374_v31 = vmul.f32 0.2, %v350_v26  ;;  %v352_v32 = vadd.f32 %v1258_v3, %v320_v30  ;;  %567 = vmatmul.mubr.bf16.vlgmr.msra.gmra.mrb[0].mxu1 %v393_v21  ;;  %vm362_vm9 = vcmp.gt.f32.partialorder %v350_v26, 0.0 }
 0x10a   :  { %vm363_vm10 = vcmp.gt.f32.partialorder %v351_v29, 0.0  ;;  %v375_v33 = vmul.f32 0.2, %v351_v29  ;;  %920 = vmatpush3.bf16.msra.mxu1 %v1020_v25  ;;  %v385_v36 = vsel %vm361_vm8, %v349_v22, %v373_v28 }
 0x10b   :  { %vm364_vm11 = vcmp.gt.f32.partialorder %v352_v32, 0.0  ;;  %v376_v35 = vmul.f32 0.2, %v352_v32  ;;  %921 = vmatprep.subr.bf16.mxu1 %v1030_v60  ;;  %v386_v39 = vsel %vm362_vm9, %v350_v26, %v374_v31 }
 0x10c   :  { %v387_v37 = vsel %vm363_vm10, %v351_v29, %v375_v33 }
 0x10d   :  { %v324_v38 = vpop.f32.mrb[8].mxu0  ;;  %v388_v40 = vsel %vm364_vm11, %v352_v32, %v376_v35  ;;  %v395_v41 = vpack.c.bf16 %v387_v37, %v385_v36 }
 0x10e   :  { %v353_v42 = vadd.f32 %v338_v2, %v324_v38  ;;  %v326_v43 = vpop.f32.mrb[9].mxu0  ;;  %v396_v44 = vpack.c.bf16 %v388_v40, %v386_v39  ;;  %922 = vmatpush3.bf16.msra.mxu1 %v1021_v34 }
 0x10f   :  { %v354_v46 = vadd.f32 %v1258_v3, %v326_v43  ;;  %v328_v47 = vpop.f32.mrb[10].mxu0  ;;  %923 = vmatprep.subr.bf16.mxu1 %v1030_v60 }
 0x110   :  { %v377_v48 = vmul.f32 0.2, %v353_v42  ;;  %v355_v49 = vadd.f32 %v338_v2, %v328_v47  ;;  %v330_v50 = vpop.f32.mrb[11].mxu0  ;;  %574 = vmatprep.mubr.bf16.mxu1 %v396_v44  ;;  %vm365_vm12 = vcmp.gt.f32.partialorder %v353_v42, 0.0  ;;  %v1025_v2 = vld [vmem:[%s1329_s7 + $0x28] sm:$0xff]  }
 0x111   :  { %v378_v51 = vmul.f32 0.2, %v354_v46  ;;  %v356_v52 = vadd.f32 %v1258_v3, %v330_v50  ;;  %575 = vmatmul.mubr.bf16.gmra.mrb[4].mxu1 %v395_v41  ;;  %vm366_vm13 = vcmp.gt.f32.partialorder %v354_v46, 0.0  ;;  %v1026_v3 = vld [vmem:[%s1329_s7 + $0x30] sm:$0xff]   ;;  %v861_v47 = vld [vmem:[%s1333_s8] ss:$0 sm:$0xff] }
 0x112   :  { %vm367_vm14 = vcmp.gt.f32.partialorder %v355_v49, 0.0  ;;  %v379_v53 = vmul.f32 0.2, %v355_v49  ;;  %924 = vmatpush3.bf16.msra.mxu1 %v1022_v45  ;;  %v389_v56 = vsel %vm365_vm12, %v353_v42, %v377_v48  ;;  %v16_v45 = vstv %s1332_s10 }
 0x113   :  { %vm368_vm15 = vcmp.gt.f32.partialorder %v356_v52, 0.0  ;;  %v380_v55 = vmul.f32 0.2, %v356_v52  ;;  %925 = vmatprep.subr.bf16.mxu1 %v1030_v60  ;;  %v390_v58 = vsel %vm366_vm13, %v354_v46, %v378_v51  ;;  %17 = vst [vmem:[#allocation2] sm:$0x1] %v16_v45  ;;  %vm812_vm13 = vcmask 385024  }
 0x114   :  { %v391_v57 = vsel %vm367_vm14, %v355_v49, %v379_v53 }
 0x115   :  { %v392_v59 = vsel %vm368_vm15, %v356_v52, %v380_v55  ;;  %v397_v61 = vpack.c.bf16 %v391_v57, %v389_v56 }
 0x116   :  { %v398_v0 = vpack.c.bf16 %v392_v59, %v390_v58  ;;  %926 = vmatpush3.bf16.msra.mxu1 %v1023_v54 }
 0x117   :  { %927 = vmatprep.subr.bf16.mxu1 %v1030_v60 }
 0x118   :  { %582 = vmatprep.mubr.bf16.mxu1 %v398_v0 }
 0x119   :  { %583 = vmatmul.mubr.bf16.gmra.mrb[8].mxu1 %v397_v61 }
 0x11a   :  { %928 = vmatpush3.bf16.msra.mxu1 %v1024_v1  ;;  %935 = vmatprep.mubr.msk.bf16.mxu1 %vm1031_vm0, %v1030_v60  ;;  %v762_v46 = vld [vmem:[#allocation2] sm:$0x1] }
 0x11b   :  { %929 = vmatprep.subr.bf16.mxu1 %v1030_v60  ;;  %765 = vperm.xlu0 %973, %v762_v46  }
 0x11e   :  { %930 = vmatpush3.bf16.msra.mxu1 %v1025_v2 }
 0x11f   :  { %931 = vmatprep.subr.bf16.mxu1 %v1030_v60 }
 0x122   :  { %932 = vmatpush3.bf16.msra.mxu1 %v1026_v3 }
 0x123   :  { %933 = vmatprep.subr.bf16.mxu1 %v1030_v60 }
 0x126   :  { %934 = vmatpush3.bf16.msra.mxu1 %v1027_v4 }
 0x1dc   :  { %v886_v5 = vpop.f32.mrb[0].mxu1 }
 0x1dd   :  { %v887_v7 = vpop.f32.mrb[1].mxu1 }
 0x1de   :  { %v888_v8 = vadd.f32 %v887_v7, %v886_v5  ;;  %v889_v9 = vpop.f32.mrb[2].mxu1 }
 0x1df   :  { %v890_v10 = vpop.f32.mrb[3].mxu1 }
 0x1e0   :  { %v569_v11 = vadd.f32 %v888_v8, %v844_v6  ;;  %v891_v12 = vadd.f32 %v890_v10, %v889_v9 }
 0x1e2   :  { %v597_v13 = vmul.f32 0.2, %v569_v11  ;;  %v572_v14 = vadd.f32 %v891_v12, %v844_v6  ;;  %vm591_vm1 = vcmp.gt.f32.partialorder %v569_v11, 0.0 }
 0x1e4   :  { %vm592_vm2 = vcmp.gt.f32.partialorder %v572_v14, 0.0  ;;  %v598_v15 = vmul.f32 0.2, %v572_v14  ;;  %v892_v16 = vpop.f32.mrb[4].mxu1  ;;  %v603_v18 = vsel %vm591_vm1, %v569_v11, %v597_v13 }
 0x1e5   :  { %v893_v17 = vpop.f32.mrb[5].mxu1 }
 0x1e6   :  { %v604_v19 = vsel %vm592_vm2, %v572_v14, %v598_v15  ;;  %v894_v20 = vadd.f32 %v893_v17, %v892_v16  ;;  %v895_v21 = vpop.f32.mrb[6].mxu1 }
 0x1e7   :  { %v609_v22 = vpack.c.bf16 %v604_v19, %v603_v18  ;;  %v896_v23 = vpop.f32.mrb[7].mxu1 }
 0x1e8   :  { %v577_v24 = vadd.f32 %v894_v20, %v844_v6  ;;  %v897_v25 = vadd.f32 %v896_v23, %v895_v21  ;;  %v758_v20 = vld [vmem:[%s1334_s9] sm:$0x1]  ;;  %v766_v21 = vpop.permute.xlu0 %765 }
 0x1e9   :  { %936 = vmatmul.mubr.bf16.vlgmr.msra.gmra.mrb[12].mxu1 %v609_v22  ;;  %v771_v22 = vrot.slane %v766_v21, %v337_v63 }
 0x1ea   :  { %v599_v26 = vmul.f32 0.2, %v577_v24  ;;  %v580_v27 = vadd.f32 %v897_v25, %v844_v6  ;;  %939 = vmatprep.mubr.msk.bf16.mxu1 %vm1031_vm0, %v1030_v60  ;;  %vm593_vm3 = vcmp.gt.f32.partialorder %v577_v24, 0.0 }
 0x1ec   :  { %vm594_vm4 = vcmp.gt.f32.partialorder %v580_v27, 0.0  ;;  %v600_v28 = vmul.f32 0.2, %v580_v27  ;;  %v898_v29 = vpop.f32.mrb[8].mxu1  ;;  %v605_v33 = vsel %vm593_vm3, %v577_v24, %v599_v26 }
 0x1ed   :  { %v899_v30 = vpop.f32.mrb[9].mxu1 }
 0x1ee   :  { %v900_v31 = vadd.f32 %v899_v30, %v898_v29  ;;  %v901_v32 = vpop.f32.mrb[10].mxu1  ;;  %v606_v34 = vsel %vm594_vm4, %v580_v27, %v600_v28 }
 0x1ef   :  { %v902_v35 = vpop.f32.mrb[11].mxu1  ;;  %v610_v36 = vpack.c.bf16 %v606_v34, %v605_v33 }
 0x1f0   :  { %v585_v37 = vadd.f32 %v900_v31, %v844_v6  ;;  %v903_v38 = vadd.f32 %v902_v35, %v901_v32 }
 0x1f1   :  { %940 = vmatmul.mubr.bf16.gmra.mrb[16].mxu1 %v610_v36 }
 0x1f2   :  { %v601_v39 = vmul.f32 0.2, %v585_v37  ;;  %v588_v40 = vadd.f32 %v903_v38, %v844_v6  ;;  %943 = vmatprep.mubr.msk.bf16.mxu1 %vm1031_vm0, %v1030_v60  ;;  %vm595_vm5 = vcmp.gt.f32.partialorder %v585_v37, 0.0 }
 0x1f4   :  { %vm596_vm6 = vcmp.gt.f32.partialorder %v588_v40, 0.0  ;;  %v602_v41 = vmul.f32 0.2, %v588_v40  ;;  %v607_v42 = vsel %vm595_vm5, %v585_v37, %v601_v39 }
 0x1f6   :  { %v608_v43 = vsel %vm596_vm6, %v588_v40, %v602_v41 }
 0x1f7   :  { %v611_v44 = vpack.c.bf16 %v608_v43, %v607_v42 }
 0x1f9   :  { %944 = vmatmul.mubr.bf16.gmra.mrb[20].mxu1 %v611_v44 }
 0x2bc   :  { %v717_v48 = vpop.f32.mrb[12].mxu1 }
 0x2bd   :  { %v718_v49 = vadd.f32 %v861_v47, %v717_v48  ;;  %v937_v50 = vpop.f32.mrb[13].mxu1 }
 0x2be   :  { %v720_v51 = vpop.f32.mrb[14].mxu1 }
 0x2bf   :  { %v746_v52 = vmul.f32 0.2, %v718_v49  ;;  %v721_v53 = vadd.f32 %v861_v47, %v720_v51  ;;  %v938_v54 = vpop.f32.mrb[15].mxu1  ;;  %vm740_vm7 = vcmp.gt.f32.partialorder %v718_v49, 0.0 }
 0x2c1   :  { %vm741_vm8 = vcmp.gt.f32.partialorder %v721_v53, 0.0  ;;  %v747_v55 = vmul.f32 0.2, %v721_v53  ;;  %v752_v56 = vsel %vm740_vm7, %v718_v49, %v746_v52 }
 0x2c3   :  { %v753_v57 = vsel %vm741_vm8, %v721_v53, %v747_v55 }
 0x2c4   :  { %v759_v58 = vpack.c.bf16 %v753_v57, %v752_v56  ;;  %v725_v59 = vpop.f32.mrb[16].mxu1 }
 0x2c5   :  { %v726_v61 = vadd.f32 %v861_v47, %v725_v59  ;;  %v941_v0 = vpop.f32.mrb[17].mxu1 }
 0x2c6   :  { %v728_v1 = vpop.f32.mrb[18].mxu1  ;;  %948 = vmatpush3.bf16.xpose.msra.mxu0 %v759_v58 }
 0x2c7   :  { %v748_v2 = vmul.f32 0.2, %v726_v61  ;;  %v729_v3 = vadd.f32 %v861_v47, %v728_v1  ;;  %v942_v4 = vpop.f32.mrb[19].mxu1  ;;  %949 = vmatprep.subr.bf16.mxu0 %v1030_v60  ;;  %vm742_vm9 = vcmp.gt.f32.partialorder %v726_v61, 0.0 }
 0x2c9   :  { %vm743_vm10 = vcmp.gt.f32.partialorder %v729_v3, 0.0  ;;  %v749_v5 = vmul.f32 0.2, %v729_v3  ;;  %v754_v6 = vsel %vm742_vm9, %v726_v61, %v748_v2 }
 0x2cb   :  { %v755_v7 = vsel %vm743_vm10, %v729_v3, %v749_v5 }
 0x2cc   :  { %v760_v8 = vpack.c.bf16 %v755_v7, %v754_v6  ;;  %v733_v9 = vpop.f32.mrb[20].mxu1 }
 0x2cd   :  { %v734_v10 = vadd.f32 %v861_v47, %v733_v9  ;;  %v945_v11 = vpop.f32.mrb[21].mxu1 }
 0x2ce   :  { %v736_v12 = vpop.f32.mrb[22].mxu1  ;;  %950 = vmatpush3.bf16.xpose.msra.mxu0 %v760_v8 }
 0x2cf   :  { %v750_v13 = vmul.f32 0.2, %v734_v10  ;;  %v737_v14 = vadd.f32 %v861_v47, %v736_v12  ;;  %v946_v15 = vpop.f32.mrb[23].mxu1  ;;  %951 = vmatprep.subr.bf16.mxu0 %v1030_v60  ;;  %vm744_vm11 = vcmp.gt.f32.partialorder %v734_v10, 0.0 }
 0x2d1   :  { %vm745_vm12 = vcmp.gt.f32.partialorder %v737_v14, 0.0  ;;  %v751_v16 = vmul.f32 0.2, %v737_v14  ;;  %v756_v17 = vsel %vm744_vm11, %v734_v10, %v750_v13 }
 0x2d3   :  { %v757_v18 = vsel %vm745_vm12, %v737_v14, %v751_v16 }
 0x2d4   :  { %v761_v19 = vpack.c.bf16 %v757_v18, %v756_v17 }
 0x2d6   :  { %952 = vmatpush3.bf16.xpose.msra.mxu0 %v761_v19 }
 0x2dd   :  { %954 = vmatmul.mubr.bf16.vlgmr.msra.gmra.mrb[12].mxu0 %v758_v20 }
 0x3b0   :  { %v806_v23 = vpop.f32.mrb[12].mxu0 }
 0x3b1   :  { %v807_v24 = vadd.f32 %v806_v23, %v771_v22  ;;  %v955_v60 = vpop.f32.mrb[13].mxu0 }
 0x3b2   :  { %v809_v25 = vpop.f32.mrb[14].mxu0 }
 0x3b3   :  { %813 = vst.msk [vmem:[%s1335_s11] sm:$0x1] %vm812_vm13, %v807_v24  ;;  %v956_v26 = vpop.f32.mrb[15].mxu0 }

</bundles_post_ra>
